<compile_context>
chip_gen: v7x
topology: tpu7x:2x2x1
jax: 0.10.0
libtpu: 0.0.40
codegen_flags: <defaults>
</compile_context>

<pallas_src>
import functools

import jax
import jax.numpy as jnp
from jax.experimental import pallas as pl
from jax.experimental.pallas import tpu as pltpu

LN_EPS = 1e-5
NEG_INF = float(jnp.finfo(jnp.float32).min)


# ---------------------------------------------------------------------------
# In-kernel helpers (traced inside Pallas kernels)
# ---------------------------------------------------------------------------

def _mm(a, b):
    """MXU matmul: bf16 inputs, f32 accumulation."""
    return jnp.dot(a.astype(jnp.bfloat16), b.astype(jnp.bfloat16),
                   preferred_element_type=jnp.float32)


def _layer_norm(x, g, b):
    mu = jnp.mean(x, axis=-1, keepdims=True)
    var = jnp.mean((x - mu) ** 2, axis=-1, keepdims=True)
    return (x - mu) * jax.lax.rsqrt(var + LN_EPS) * g + b


def _attn_block(q, k, v, o_w, num_heads, mask):
    """Multi-head attention + fused output projection.

    q:[Sq,D] k,v:[Sk,D] (Q already pre-scaled). Heads are statically unrolled;
    per-head out-projection against row slices of o_w accumulates directly, so
    no head transpose / concat is needed.  Returns [Sq, D] (o_w applied, no bias).
    """
    D = q.shape[-1]
    Dh = D // num_heads
    out = None
    for h in range(num_heads):
        lo, hi = h * Dh, (h + 1) * Dh
        s = _mm(q[:, lo:hi], k[:, lo:hi].T)          # [Sq, Sk] f32
        if mask is not None:
            s = s + mask
        p = jax.nn.softmax(s, axis=-1)               # f32
        oh = _mm(p, v[:, lo:hi])                     # [Sq, Dh]
        proj = _mm(oh, o_w[lo:hi, :])                # [Sq, D]
        out = proj if out is None else out + proj
    return out


# ---------------------------------------------------------------------------
# Pallas kernels
# ---------------------------------------------------------------------------

def _decoder_layer_kernel(
        h_ref, enc_ref,
        sa_qkv_w_ref, sa_qkv_b_ref, sa_o_w_ref, sa_o_b_ref, sa_g_ref, sa_b_ref,
        ca_q_w_ref, ca_q_b_ref, ca_kv_w_ref, ca_kv_b_ref, ca_o_w_ref, ca_o_b_ref,
        ca_g_ref, ca_b_ref,
        fc1_w_ref, fc1_b_ref, fc2_w_ref, fc2_b_ref, fin_g_ref, fin_b_ref,
        o_ref, *, num_heads):
    """One post-norm BART decoder layer, fully fused, one batch row per grid step."""
    h = h_ref[0]                       # [S, D]  f32
    enc = enc_ref[0]                   # [Se, D] f32
    S, D = h.shape

    # ---- self attention (causal mask built in-kernel; Q pre-scaled in weights)
    qkv = _mm(h, sa_qkv_w_ref[...]) + sa_qkv_b_ref[...]     # [S, 3D]
    row = jax.lax.broadcasted_iota(jnp.int32, (S, S), 0)
    col = jax.lax.broadcasted_iota(jnp.int32, (S, S), 1)
    causal = jnp.where(row >= col, 0.0, NEG_INF)
    attn = _attn_block(qkv[:, :D], qkv[:, D:2 * D], qkv[:, 2 * D:],
                       sa_o_w_ref[...], num_heads, causal)
    h = _layer_norm(h + attn + sa_o_b_ref[...], sa_g_ref[...], sa_b_ref[...])

    # ---- cross attention (no mask)
    q = _mm(h, ca_q_w_ref[...]) + ca_q_b_ref[...]           # [S, D]
    kv = _mm(enc, ca_kv_w_ref[...]) + ca_kv_b_ref[...]      # [Se, 2D]
    attn = _attn_block(q, kv[:, :D], kv[:, D:], ca_o_w_ref[...], num_heads, None)
    h = _layer_norm(h + attn + ca_o_b_ref[...], ca_g_ref[...], ca_b_ref[...])

    # ---- feed-forward (exact erf gelu, as HF BART 'gelu')
    f = jax.nn.gelu(_mm(h, fc1_w_ref[...]) + fc1_b_ref[...], approximate=False)
    f = _mm(f, fc2_w_ref[...]) + fc2_b_ref[...]
    o_ref[0] = _layer_norm(h + f, fin_g_ref[...], fin_b_ref[...])


def _adapter_in_kernel(state_ref, prev_ref, down_w_ref, down_b_ref,
                       pos_ref, g_ref, b_ref, o_ref):
    # fusion = lm_state + prev_adapter_out; h = LN(down(fusion) + pos_emb)
    fusion = state_ref[0] + prev_ref[0]
    down = _mm(fusion, down_w_ref[...]) + down_b_ref[...]
    o_ref[0] = _layer_norm(down + pos_ref[...], g_ref[...], b_ref[...])


def _adapter_out_kernel(h_ref, state_ref, prev_ref, up_w_ref, up_b_ref, o_ref):
    # out = fusion + up_project(h)   (fusion recomputed in VMEM; no HBM temp)
    fusion = state_ref[0] + prev_ref[0]
    o_ref[0] = fusion + _mm(h_ref[0], up_w_ref[...]) + up_b_ref[...]


def _linear_kernel(x_ref, w_ref, b_ref, o_ref):
    o_ref[0] = _mm(x_ref[0], w_ref[...]) + b_ref[...]


def _concat_dense_kernel(a_ref, b_ref, w1_ref, w2_ref, bias_ref, o_ref):
    # out = concat([a, b], -1) @ W + bias  ==  a @ W1 + b @ W2 + bias (split weight)
    o_ref[0] = (_mm(a_ref[0], w1_ref[...]) + _mm(b_ref[0], w2_ref[...])
                + bias_ref[...])


# ---------------------------------------------------------------------------
# pallas_call wrappers (grid over batch; "parallel" for v7x dual-TC)
# ---------------------------------------------------------------------------

def _full_spec(shape):
    return pl.BlockSpec(shape, lambda b, _n=len(shape): (0,) * _n)


def _row_spec(s, d):
    return pl.BlockSpec((1, s, d), lambda b: (b, 0, 0))


_PARALLEL = pltpu.CompilerParams(dimension_semantics=("parallel",))


def bart_decoder_layer(h, enc, lp, num_heads):
    B, S, D = h.shape
    Se = enc.shape[1]
    weights = (lp["sa_qkv_w"], lp["sa_qkv_b"], lp["sa_o_w"], lp["sa_o_b"],
               lp["sa_ln_g"], lp["sa_ln_b"],
               lp["ca_q_w"], lp["ca_q_b"], lp["ca_kv_w"], lp["ca_kv_b"],
               lp["ca_o_w"], lp["ca_o_b"], lp["ca_ln_g"], lp["ca_ln_b"],
               lp["fc1_w"], lp["fc1_b"], lp["fc2_w"], lp["fc2_b"],
               lp["fin_ln_g"], lp["fin_ln_b"])
    return pl.pallas_call(
        functools.partial(_decoder_layer_kernel, num_heads=num_heads),
        out_shape=jax.ShapeDtypeStruct((B, S, D), jnp.float32),
        grid=(B,),
        in_specs=[_row_spec(S, D), _row_spec(Se, D)]
                 + [_full_spec(w.shape) for w in weights],
        out_specs=_row_spec(S, D),
        compiler_params=_PARALLEL,
    )(h, enc, *weights)


def adapter_layer_forward(lm_state, prev_out, enc_proj, ap, num_heads):
    """down_project -> internal BartDecoder -> up_project (+ residual to fusion)."""
    B, S, d_lm = lm_state.shape
    d_ad = ap["down_w"].shape[1]
    pos = ap["pos_emb"][2:2 + S]                # learned positions, offset 2

    h = pl.pallas_call(
        _adapter_in_kernel,
        out_shape=jax.ShapeDtypeStruct((B, S, d_ad), jnp.float32),
        grid=(B,),
        in_specs=[_row_spec(S, d_lm), _row_spec(S, d_lm),
                  _full_spec(ap["down_w"].shape), _full_spec(ap["down_b"].shape),
                  _full_spec((S, d_ad)),
                  _full_spec(ap["emb_ln_g"].shape), _full_spec(ap["emb_ln_b"].shape)],
        out_specs=_row_spec(S, d_ad),
        compiler_params=_PARALLEL,
    )(lm_state, prev_out, ap["down_w"], ap["down_b"], pos,
      ap["emb_ln_g"], ap["emb_ln_b"])

    for lp in ap["layers"]:
        h = bart_decoder_layer(h, enc_proj, lp, num_heads)

    return pl.pallas_call(
        _adapter_out_kernel,
        out_shape=jax.ShapeDtypeStruct((B, S, d_lm), jnp.float32),
        grid=(B,),
        in_specs=[_row_spec(S, d_ad), _row_spec(S, d_lm), _row_spec(S, d_lm),
                  _full_spec(ap["up_w"].shape), _full_spec(ap["up_b"].shape)],
        out_specs=_row_spec(S, d_lm),
        compiler_params=_PARALLEL,
    )(h, lm_state, prev_out, ap["up_w"], ap["up_b"])


def adapter_decoder_forward(params, encoder_hidden_states, lm_decoder_states,
                            adapter_list, num_heads):
    B, S_enc, d_lm = encoder_hidden_states.shape
    d_ad = params["down_enc_w"].shape[1]

    # encoder states projected once to the adapter width
    enc_proj = pl.pallas_call(
        _linear_kernel,
        out_shape=jax.ShapeDtypeStruct((B, S_enc, d_ad), jnp.float32),
        grid=(B,),
        in_specs=[_row_spec(S_enc, d_lm),
                  _full_spec(params["down_enc_w"].shape),
                  _full_spec(params["down_enc_b"].shape)],
        out_specs=_row_spec(S_enc, d_ad),
        compiler_params=_PARALLEL,
    )(encoder_hidden_states, params["down_enc_w"], params["down_enc_b"])

    final_decoder_states = lm_decoder_states[-1]
    hidden_adapter_out = jnp.zeros_like(final_decoder_states)

    adapter_hidden_states = ()
    for i, ap in enumerate(params["adapters"]):
        hidden_adapter_out = adapter_layer_forward(
            lm_decoder_states[adapter_list[i]], hidden_adapter_out,
            enc_proj, ap, num_heads)
        adapter_hidden_states = adapter_hidden_states + (hidden_adapter_out,)
        # TODO(synk): adapter_skip_layers > 0 branch (reference code has a typo
        # `args.dapter_skip_layers`); we run with adapter_skip_layers = 0.

    B, S, _ = final_decoder_states.shape
    concatenated_features = pl.pallas_call(
        _concat_dense_kernel,
        out_shape=jax.ShapeDtypeStruct((B, S, d_lm), jnp.float32),
        grid=(B,),
        in_specs=[_row_spec(S, d_lm), _row_spec(S, d_lm),
                  _full_spec(params["concat_w1"].shape),
                  _full_spec(params["concat_w2"].shape),
                  _full_spec(params["concat_b"].shape)],
        out_specs=_row_spec(S, d_lm),
        compiler_params=_PARALLEL,
    )(final_decoder_states, hidden_adapter_out,
      params["concat_w1"], params["concat_w2"], params["concat_b"])

    # mimic return_dict=False: (last_hidden, next_cache, adapter_hidden, attns, cross)
    return (concatenated_features, None, adapter_hidden_states, None, None)


# ---------------------------------------------------------------------------
# Parameter construction (raw, PyTorch-layout) + prep (fuse / fold / cast)
# ---------------------------------------------------------------------------

def _dense(key, k_in, k_out, std=0.02):
    w = jax.random.normal(key, (k_in, k_out), jnp.float32) * std
    b = jnp.zeros((k_out,), jnp.float32)
    return w, b


def _attn_params(key, d):
    ks = jax.random.split(key, 4)
    qw, qb = _dense(ks[0], d, d)
    kw, kb = _dense(ks[1], d, d)
    vw, vb = _dense(ks[2], d, d)
    ow, ob = _dense(ks[3], d, d)
    return dict(q_w=qw, q_b=qb, k_w=kw, k_b=kb, v_w=vw, v_b=vb, o_w=ow, o_b=ob)


def _decoder_layer_params(key, d, ffn):
    ks = jax.random.split(key, 4)
    fc1_w, fc1_b = _dense(ks[2], d, ffn)
    fc2_w, fc2_b = _dense(ks[3], ffn, d)
    return dict(
        self_attn=_attn_params(ks[0], d),
        self_ln_g=jnp.ones((d,), jnp.float32), self_ln_b=jnp.zeros((d,), jnp.float32),
        cross_attn=_attn_params(ks[1], d),
        cross_ln_g=jnp.ones((d,), jnp.float32), cross_ln_b=jnp.zeros((d,), jnp.float32),
        fc1_w=fc1_w, fc1_b=fc1_b, fc2_w=fc2_w, fc2_b=fc2_b,
        final_ln_g=jnp.ones((d,), jnp.float32), final_ln_b=jnp.zeros((d,), jnp.float32),
    )


def _adapter_params(key, d_lm, d_ad, ffn, n_layers, max_pos):
    ks = jax.random.split(key, 3 + n_layers)
    down_w, down_b = _dense(ks[0], d_lm, d_ad)
    up_w, up_b = _dense(ks[1], d_ad, d_lm)
    pos_emb = jax.random.normal(ks[2], (max_pos + 2, d_ad), jnp.float32) * 0.02
    layers = [_decoder_layer_params(ks[3 + i], d_ad, ffn) for i in range(n_layers)]
    return dict(
        down_w=down_w, down_b=down_b, up_w=up_w, up_b=up_b, pos_emb=pos_emb,
        emb_ln_g=jnp.ones((d_ad,), jnp.float32),
        emb_ln_b=jnp.zeros((d_ad,), jnp.float32),
        layers=layers,
    )


def _bf16(x):
    return x.astype(jnp.bfloat16)


def _r2(x):
    return x.reshape(1, -1)


def _prep_decoder_layer(lp, num_heads):
    sa, ca = lp["self_attn"], lp["cross_attn"]
    d = sa["q_w"].shape[0]
    scale = (d // num_heads) ** -0.5          # folded into Q weights/bias
    return dict(
        sa_qkv_w=_bf16(jnp.concatenate([sa["q_w"] * scale, sa["k_w"], sa["v_w"]], 1)),
        sa_qkv_b=_r2(jnp.concatenate([sa["q_b"] * scale, sa["k_b"], sa["v_b"]])),
        sa_o_w=_bf16(sa["o_w"]), sa_o_b=_r2(sa["o_b"]),
        sa_ln_g=_r2(lp["self_ln_g"]), sa_ln_b=_r2(lp["self_ln_b"]),
        ca_q_w=_bf16(ca["q_w"] * scale), ca_q_b=_r2(ca["q_b"] * scale),
        ca_kv_w=_bf16(jnp.concatenate([ca["k_w"], ca["v_w"]], 1)),
        ca_kv_b=_r2(jnp.concatenate([ca["k_b"], ca["v_b"]])),
        ca_o_w=_bf16(ca["o_w"]), ca_o_b=_r2(ca["o_b"]),
        ca_ln_g=_r2(lp["cross_ln_g"]), ca_ln_b=_r2(lp["cross_ln_b"]),
        fc1_w=_bf16(lp["fc1_w"]), fc1_b=_r2(lp["fc1_b"]),
        fc2_w=_bf16(lp["fc2_w"]), fc2_b=_r2(lp["fc2_b"]),
        fin_ln_g=_r2(lp["final_ln_g"]), fin_ln_b=_r2(lp["final_ln_b"]),
    )


def _prep_adapter(ap, num_heads):
    return dict(
        down_w=_bf16(ap["down_w"]), down_b=_r2(ap["down_b"]),
        up_w=_bf16(ap["up_w"]), up_b=_r2(ap["up_b"]),
        pos_emb=ap["pos_emb"],
        emb_ln_g=_r2(ap["emb_ln_g"]), emb_ln_b=_r2(ap["emb_ln_b"]),
        layers=[_prep_decoder_layer(lp, num_heads) for lp in ap["layers"]],
    )


def prepare_params(raw, num_heads):
    d_lm = raw["concat_w"].shape[1]
    return dict(
        adapters=[_prep_adapter(a, num_heads) for a in raw["adapters"]],
        down_enc_w=_bf16(raw["down_enc_w"]), down_enc_b=_r2(raw["down_enc_b"]),
        concat_w1=_bf16(raw["concat_w"][:d_lm]),
        concat_w2=_bf16(raw["concat_w"][d_lm:]),
        concat_b=_r2(raw["concat_b"]),
    )


# ---------------------------------------------------------------------------
# Demo
# ---------------------------------------------------------------------------

if __name__ == "__main__":
    # small synthetic config (args.adapter_size=16, adapter_num_heads=2,
    # adapter_ffn_size=32, adapter_num_layers=1; LM d_model=32; 2 adapters)
    B, S_dec, S_enc = 2, 8, 8
    d_lm = 32          # pretrained LM hidden size
    d_ad = 16          # adapter (bottleneck) hidden size
    n_heads = 2
    ffn = 32
    n_internal_layers = 1
    max_pos = 64
    adapter_list = [0, 1]          # which LM decoder hidden states feed each adapter
    n_lm_decoder_states = 3        # embeddings + 2 LM decoder layers

    key = jax.random.PRNGKey(0)
    k_params, k_enc, k_states = jax.random.split(key, 3)

    ka = jax.random.split(k_params, len(adapter_list) + 2)
    adapters = [
        _adapter_params(ka[i], d_lm, d_ad, ffn, n_internal_layers, max_pos)
        for i in range(len(adapter_list))
    ]
    down_enc_w, down_enc_b = _dense(ka[-2], d_lm, d_ad)
    concat_w, concat_b = _dense(ka[-1], 2 * d_lm, d_lm)
    raw_params = dict(
        adapters=adapters,
        down_enc_w=down_enc_w, down_enc_b=down_enc_b,
        concat_w=concat_w, concat_b=concat_b,
    )
    params = prepare_params(raw_params, n_heads)

    encoder_hidden_states = jax.random.normal(k_enc, (B, S_enc, d_lm), jnp.float32)
    ks = jax.random.split(k_states, n_lm_decoder_states)
    lm_decoder_states = tuple(
        jax.random.normal(ks[i], (B, S_dec, d_lm), jnp.float32)
        for i in range(n_lm_decoder_states)
    )

    out = adapter_decoder_forward(
        params, encoder_hidden_states, lm_decoder_states, adapter_list, n_heads
    )
    last_hidden = out[0]
    jax.block_until_ready(last_hidden)
    assert last_hidden.shape == (B, S_dec, d_lm)
    assert len(out[2]) == len(adapter_list)
    print("KERNEL_OK")
</pallas_src>

<mosaic_0001>
module attributes {stable_mosaic.version = 11 : i64} {
  func.func @_linear_kernel(%arg0: i32, %arg1: memref<1x8x32xf32, #tpu.memory_space<vmem>>, %arg2: memref<32x16xbf16, #tpu.memory_space<vmem>>, %arg3: memref<1x16xf32, #tpu.memory_space<vmem>>, %arg4: memref<1x8x16xf32, #tpu.memory_space<vmem>>) attributes {dimension_semantics = [#tpu.dimension_semantics<parallel>], iteration_bounds = array<i64: 2>, scalar_prefetch = 0 : i64, scratch_operands = 0 : i64, tpu.core_type = #tpu.core_type<tc>, window_params = [{transform_indices = @transform_0, window_bounds = array<i64: 1, 8, 32>}, {pipeline_mode = #tpu.pipeline_mode<synchronous>, transform_indices = @transform_1, window_bounds = array<i64: 32, 16>}, {pipeline_mode = #tpu.pipeline_mode<synchronous>, transform_indices = @transform_2, window_bounds = array<i64: 1, 16>}, {transform_indices = @transform_3, window_bounds = array<i64: 1, 8, 16>}]} {
    %c0 = arith.constant 0 : index
    %c0_0 = arith.constant 0 : index
    %c0_1 = arith.constant 0 : index
    %0 = vector.load %arg1[%c0, %c0_0, %c0_1] : memref<1x8x32xf32, #tpu.memory_space<vmem>>, vector<1x8x32xf32>
    %1 = vector.shape_cast %0 : vector<1x8x32xf32> to vector<8x32xf32>
    %c0_2 = arith.constant 0 : index
    %c0_3 = arith.constant 0 : index
    %2 = vector.load %arg2[%c0_2, %c0_3] : memref<32x16xbf16, #tpu.memory_space<vmem>>, vector<32x16xbf16>
    %3 = arith.truncf %1 : vector<8x32xf32> to vector<8x32xbf16>
    %cst = arith.constant dense<0.000000e+00> : vector<8x16xf32>
    %4 = tpu.matmul %3, %2, %cst {dimension_numbers = #tpu.dot_dimension_numbers<[1], [0], [0], [1], [0, 0, 1, 1], [], []>} : vector<8x32xbf16>, vector<32x16xbf16>, vector<8x16xf32> -> vector<8x16xf32>
    %c0_4 = arith.constant 0 : index
    %c0_5 = arith.constant 0 : index
    %5 = vector.load %arg3[%c0_4, %c0_5] : memref<1x16xf32, #tpu.memory_space<vmem>>, vector<1x16xf32>
    %6 = vector.broadcast %5 : vector<1x16xf32> to vector<8x16xf32>
    %7 = arith.addf %4, %6 : vector<8x16xf32>
    %c0_6 = arith.constant 0 : index
    %c0_7 = arith.constant 0 : index
    %c0_8 = arith.constant 0 : index
    %8 = vector.load %arg4[%c0_6, %c0_7, %c0_8] : memref<1x8x16xf32, #tpu.memory_space<vmem>>, vector<1x8x16xf32>
    %9 = vector.shape_cast %8 : vector<1x8x16xf32> to vector<8x16xf32>
    %10 = vector.shape_cast %7 : vector<8x16xf32> to vector<1x8x16xf32>
    tpu.vector_store %arg4[%c0_6, %c0_7, %c0_8], %10 {strides = array<i32>} : memref<1x8x16xf32, #tpu.memory_space<vmem>>, vector<1x8x16xf32>,
    return
  }
  func.func @transform_0(%arg0: i32) -> (i32, i32, i32) {
    %c0_i32 = arith.constant 0 : i32
    %c0_i32_0 = arith.constant 0 : i32
    %c0_i32_1 = arith.constant 0 : i32
    return %arg0, %c0_i32, %c0_i32_0 : i32, i32, i32
  }
  func.func @transform_1(%arg0: i32) -> (i32, i32) {
    %c0_i32 = arith.constant 0 : i32
    %c0_i32_0 = arith.constant 0 : i32
    %c0_i32_1 = arith.constant 0 : i32
    return %c0_i32, %c0_i32_0 : i32, i32
  }
  func.func @transform_2(%arg0: i32) -> (i32, i32) {
    %c0_i32 = arith.constant 0 : i32
    %c0_i32_0 = arith.constant 0 : i32
    %c0_i32_1 = arith.constant 0 : i32
    return %c0_i32, %c0_i32_0 : i32, i32
  }
  func.func @transform_3(%arg0: i32) -> (i32, i32, i32) {
    %c0_i32 = arith.constant 0 : i32
    %c0_i32_0 = arith.constant 0 : i32
    %c0_i32_1 = arith.constant 0 : i32
    return %arg0, %c0_i32, %c0_i32_0 : i32, i32, i32
  }
}

</mosaic_0001>

<bundles_post_ra>
// kernel: tpu_custom_call.1
= control target key start
LH: loop header
LB: loop body
LE: loop exit
PB: predicated region body
PF: predicated region fallthrough
CT: control target
= control target key end

     0   :  { %8 = vsyncpa [#allocation3], 0  ;;  %s575_s0 = inlined_call_operand.vmem [shape: f32[2,8,32], index: 0, kind: input, shape index: {}]   ;;  %s576_s1 = inlined_call_operand.vmem [shape: bf16[32,16], index: 1, kind: input, shape index: {}]   ;;  %s577_s2 = inlined_call_operand.vmem [shape: f32[1,16], index: 2, kind: input, shape index: {}]   ;;  %s578_s3 = inlined_call_operand.hbm [shape: f32[2,8,16], index: 3, kind: output, shape index: {}]  }
   0x1   :  { %10 = vsyncpa [#allocation3 + $0x1], 0  ;;  %s466_s12 = smov 0   ;;  %s468_s13 = smov 0  }
   0x2   :  { %s470_s14 = smov 0   ;;  %s472_s15 = smov 0  }
   0x3 LB: > { %s487_s16 = sadd.s32 4294967295, %s441_s15   ;;  %s311_s17 = sadd.s32 4294967294, %s441_s15   ;;  %s441_s15 = sphi %s472_s15, %s584_s15   ;;  %s437_s14 = sphi %s470_s14, %s583_s14   ;;  %s433_s13 = sphi %s468_s13, %s582_s13   ;;  %s429_s12 = sphi %s466_s12, %s581_s12  }
   0x4   : > { %s491_s18 = sadd.s32 1, %s441_s15   ;;  %s91_s19 = sadd.s32 1, %s437_s14 }
   0x5   : > { %s88_s20 = ssub.s32 %s441_s15, %s491_s18  ;;  %p101_p0 = scmp.ne.s32.totalorder %s437_s14, %s433_s13 }
   0x6   : > { %p89_p1 = scmp.eq.s32.totalorder %s88_s20, 0  ;;  %p102_p2 = scmp.eq.s32.totalorder %s487_s16, 1 }
   0x7   : > { %p107_p3 = scmp.ne.s32.totalorder %s433_s13, %s429_s12  ;;  %p108_p4 = scmp.eq.s32.totalorder %s311_s17, 1 }
   0x8   : > { %s502_s21 = scalar_select %p89_p1, %s437_s14, %s91_s19  }
   0x9   : > { %p504_p5 = por %p102_p2, %p101_p0  ;;  %p508_p6 = por %p108_p4, %p107_p3 }
   0xa   : > { %p314_p7 = scmp.ge.s32.totalorder %s441_s15, 1  ;;  %p139_p8 = scmp.lt.s32.totalorder %s441_s15, 3 }
   0xc   : > { %p140_p9 = pnand %p314_p7, %p139_p8 }
   0xd   : > { %v377_v0 = vld [vmem:[%s576_s1] sm:$0xff] (!%p140_p9)   ;;  %v443_v1 = vmov (!%p140_p9), 0.0   ;;  %v378_v2 = vld [vmem:[%s576_s1 + $0x8] sm:$0xff] (!%p140_p9)   ;;  %vm444_vm0 = vmmov (!%p140_p9), 0   ;;  %p162_p10 = scmp.lt.s32.totalorder (!%p140_p9), %s487_s16, 1  ;;  %vm192_vm1 = vcmask (!%p140_p9), 261120  }
   0xe   : > { %143 = sbr.rel (%p140_p9) target bundleno = 256 (0x100), region = 32  ;;  %328 = vmatprep.subr.bf16.mxu0 (!%p140_p9), %v443_v1  ;;  %332 = vmatprep.mubr.msk.bf16.mxu0 (!%p140_p9), %vm444_vm0, %v443_v1  ;;  %s159_s6 = sand.u32 (!%p140_p9), 1, %s433_s13   ;;  %v317_v5 = vld [vmem:[%s577_s2] ss:$0 sm:$0xff] (!%p140_p9)  ;;  %vm236_vm2 = vcmask (!%p140_p9), 130048  }
   0xf   : > { %329 = vmatpush3.bf16.msra.mxu0 (!%p140_p9), %v377_v0  ;;  %s315_s7 = sshll.u32 (!%p140_p9), %s159_s6, 3  ;;  %s322_s10 = sshll.u32 (!%p140_p9), %s487_s16, 7 }
  0x10   : > { %330 = vmatprep.subr.bf16.mxu0 (!%p140_p9), %v443_v1  ;;  %s161_s11 = scalar_lea.vmem (!%p140_p9), [#allocation2], %s315_s7  ;;  %s533_s24 = scalar_lea.hbm (!%p140_p9), %s578_s3, %s322_s10 }
  0x11   : > { %s252_s17 = sshll.u32 (!%p140_p9), %s161_s11, 4  ;;  %s445_s26 = smov (!%p140_p9), [#allocation2]   ;;  %s535_s17 = int_to_ptr.vmem [resolvable:$true] %s252_s17 }
  0x12   : > { %s379_s25 = scalar_lea.vmem (!%p140_p9), %s535_s17, 128  ;;  %s383_s27 = sshll.u32 (!%p140_p9), %s445_s26, 4  ;;  %s384_s27 = int_to_ptr.vmem [resolvable:$false] %s383_s27 }
  0x13   : > { %331 = vmatpush3.bf16.msra.mxu0 (!%p140_p9), %v378_v2  ;;  %p380_p11 = scmp.ne.s32.totalorder (!%p140_p9), %s535_s17, %s379_s25  ;;  %p386_p0 = scmp.lt.s32.totalorder (!%p140_p9), %s535_s17, %s384_s27 }
  0x15   : > { %s163_s28 = scalar_select %p162_p10, %s487_s16, 1 }
  0x16   : > { %s239_s16 = scalar_lea.sflag [#allocation3], %s159_s6  ;;  %p381_p12 = pnand %p380_p11, %p504_p5 }
  0x17   : > { %s316_s29 = sshll.u32 %s163_s28, 3  ;;  %s385_s28 = scalar_lea.vmem %s384_s27, 256 }
  0x18   : > { %s165_s5 = scalar_lea.vmem %s575_s0, %s316_s29  ;;  %p382_p13 = pneg %p381_p12 }
  0x19   : > { %v167_v3 = vld [vmem:[%s165_s5] sm:$0xff]  ;;  %p387_p1 = scmp.lt.s32.totalorder %s385_s28, %s379_s25 }
  0x1a   : > { %v172_v4 = vpack.c.bf16 %v167_v3, %v167_v3 }
  0x1b   : > { %p388_p2 = por %p387_p1, %p386_p0 }
  0x1c   : > { %333 = vmatmul.mubr.msk.bf16.vlgmr.msra.gmra.mrb[0].mxu0 %vm192_vm1, %v172_v4 }
  0x1d   : > { %p389_p3 = pnand %p388_p2, %p382_p13 }
  0xef   : > { %v230_v6 = vpop.f32.mrb[0].mxu0 }
  0xf0   : > { %v231_v7 = vadd.f32 %v317_v5, %v230_v6  ;;  %v334_v8 = vpop.f32.mrb[1].mxu0 }
  0xf1   : > { %v233_v9 = vpop.f32.mrb[2].mxu0 }
  0xf2   : > { %v335_v10 = vpop.f32.mrb[3].mxu0  ;;  %237 = vst.msk [vmem:[%s161_s11] sm:$0xff] %vm236_vm2, %v231_v7 }
  0xf3   : > { %392 = shalt.err (!%p389_p3)
}
  0xf4   : > { %s393_s29 = scalar_lea.hbm %s533_s24, 128  ;;  %s397_s5 = scalar_lea.hbm %s578_s3, 256 }
  0xf5   : > { %p394_p4 = scmp.ne.s32.totalorder %s533_s24, %s393_s29  ;;  %p398_p9 = scmp.lt.u32.totalorder %s533_s24, %s578_s3 }
  0xf6   : > { %p399_p10 = scmp.lt.u32.totalorder %s397_s5, %s393_s29  ;;  %p401_p12 = scmp.lt.u32.totalorder %s393_s29, %s533_s24 }
  0xf7   : > { %p395_p7 = pnand %p394_p4, %p504_p5 }
  0xf8   : > { %p400_p11 = por %p399_p10, %p398_p9 }
  0xf9   : > { %p396_p8 = pneg %p395_p7 }
  0xfa   : > { %p402_p13 = por %p401_p12, %p400_p11 }
  0xfc   : > { %p403_p0 = pnand %p402_p13, %p396_p8 }
  0xfe   : > { %406 = shalt.err (!%p403_p0)
}
  0xff   : > { %336 = dma.vmem_to_hbm [thread:$0]  (%p504_p5), %s535_s17, 128, %s533_s24, %s239_s16  }
 0x100 PF: > { %p342_p1 = scmp.ge.s32.totalorder %s441_s15, 2  ;;  %s264_s8 = sand.u32 1, %s429_s12  }
 0x101   : > { %s265_s9 = scalar_lea.sflag [#allocation3], %s264_s8 }
 0x102   : > { %p339_p2 = pnand %p342_p1, %p508_p6 }
 0x104   : > { %424 = dma.done.wait (!%p339_p2), %s265_s9, 128  }
 0x105   : > { %426 = vsyncadd (!%p339_p2), %s265_s9, 4294967168  ;;  %p13_p3 = scmp.ge.s32.totalorder %s491_s18, 4   ;;  %s581_s12 = smov %s433_s13 }
 0x106   : > { %s582_s13 = smov %s437_s14  ;;  %s583_s14 = smov %s502_s21 }
 0x107   : > { %s584_s15 = smov %s491_s18  ;;  %15 = sbr.rel (!%p13_p3) target bundleno = 3 (0x3), region = 67 }
 0x10e   :  { %270 = vsyncpa [#allocation3], 1 }
 0x10f   :  { %272 = vsyncpa [#allocation3 + $0x1], 1 }

</bundles_post_ra>
